<compile_context>
chip_gen: v6e
topology: v6e:2x2x1
jax: 0.10.0
libtpu: 0.0.40
codegen_flags: <defaults>
</compile_context>

<pallas_src>
import math

import jax
import jax.numpy as jnp
from jax import lax
from jax.experimental import pallas as pl
from jax.experimental.pallas import tpu as pltpu

KH = KW = 3
STRIDE = 2


def _downsample_conv_kernel(xq_ref, xh_ref, w_ref, b_ref, o_ref):
    # xq_ref: (1, TH, 2*Whalf, 2C) bf16 -- TH half-res rows of this block.
    #         sublane index q = r*Whalf + w2 (r = padded-row parity), lanes
    #         [0:C] = even padded col 2*w2, lanes [C:2C] = odd col 2*w2+1.
    # xh_ref: (1, 1, 2*Whalf, 2C)  bf16 -- halo half-res row just below the
    #         block (only its even-row half, q in [0, Whalf), is used).
    # w_ref : (9, C, Cout) bf16 -- per-tap weights, tap index k = kh*3 + kw.
    # b_ref : (1, Cout) f32
    # o_ref : (TH*Wo, Cout)      -- flat output rows of this block (Wo % 8 == 0).
    _, TH, twoWhalf, twoC = xq_ref.shape
    Whalf = twoWhalf // 2
    C = twoC // 2
    Wo = Whalf - 1
    M = TH * Wo

    # (w2 offset, lane offset) per kw: kw=0 -> even col w2=wo; kw=1 -> odd col
    # w2=wo; kw=2 -> even col w2=wo+1.
    col = ((0, 0), (0, C), (1, 0))

    def dot_f32(a, k):
        return jnp.dot(a, w_ref[k], preferred_element_type=jnp.float32)

    # kh = 0 (even rows, r=0) and kh = 1 (odd rows, r=1): full TH rows.
    acc = None
    for kh in (0, 1):
        for kw in (0, 1, 2):
            w_lo, c_lo = col[kw]
            q_lo = kh * Whalf + w_lo
            a = xq_ref[0, :, q_lo:q_lo + Wo, c_lo:c_lo + C]       # (TH, Wo, C)
            d = dot_f32(a.reshape(M, C), kh * 3 + kw)
            acc = d if acc is None else acc + d

    # kh = 2 taps of the LAST output row come from the halo row (even half).
    acc_last = None
    for kw in (0, 1, 2):
        w_lo, c_lo = col[kw]
        a = xh_ref[0, 0, w_lo:w_lo + Wo, c_lo:c_lo + C]           # (Wo, C)
        d = dot_f32(a, 6 + kw)
        acc_last = d if acc_last is None else acc_last + d

    bias = b_ref[...]                                             # (1, Cout) f32

    if TH > 1:
        # kh = 2 taps of output rows 0..TH-2: even-row plane shifted one h2 down.
        acc_mid = None
        for kw in (0, 1, 2):
            w_lo, c_lo = col[kw]
            a = xq_ref[0, 1:TH, w_lo:w_lo + Wo, c_lo:c_lo + C]    # (TH-1, Wo, C)
            d = dot_f32(a.reshape((TH - 1) * Wo, C), 6 + kw)
            acc_mid = d if acc_mid is None else acc_mid + d
        split = (TH - 1) * Wo                                     # multiple of 8
        o_ref[0:split, :] = (acc[0:split] + acc_mid + bias).astype(o_ref.dtype)
        o_ref[split:M, :] = (acc[split:M] + acc_last + bias).astype(o_ref.dtype)
    else:
        o_ref[...] = (acc + acc_last + bias).astype(o_ref.dtype)


def _tile_plan(N, Ho, Wo_p, C, Cout):
    """Pick output rows per grid step (TH) from a generation-aware VMEM budget."""
    try:
        vmem_cap = pltpu.get_tpu_info().vmem_capacity_bytes
    except Exception:
        vmem_cap = 64 * 1024 * 1024                 # v7x-safe fallback (64 MiB / TC)

    if vmem_cap >= 100 * 1024 * 1024:               # v5e / v6e: 128 MiB VMEM
        budget = 80 * 1024 * 1024
        vmem_limit = 100 * 1024 * 1024
        max_pixels = 8192
    else:                                           # v7x: 64 MiB per TensorCore
        budget = 32 * 1024 * 1024
        vmem_limit = 48 * 1024 * 1024
        max_pixels = 4096

    fixed = 2 * 9 * C * Cout * 2 + (1 << 20)        # dbl-buffered bf16 weights + slack
    per_pixel = 20 * C + 20 * Cout                  # dbl-buffered in/out blocks + f32 temps
    pix_budget = max(Wo_p, (budget - fixed) // per_pixel)
    pixels = min(max_pixels, pix_budget)

    th = max(1, min(Ho, pixels // Wo_p))
    nhb = -(-Ho // th)
    if N == 1 and Ho >= 2:
        nhb = max(nhb, 2)                           # keep both v7x TensorCores busy
    th = -(-Ho // nhb)                              # rebalance: ragged tail < nhb rows
    nhb = -(-Ho // th)
    return th, nhb, vmem_limit


def downsample_block(x, weight, bias, *, compute_dtype=jnp.bfloat16,
                     out_format="NCHW"):
    """x: (N, C, H, W); weight: (Cout, Cin, 3, 3); bias: (Cout,).

    Equivalent to F.pad(x, (0, 1, 0, 1)) followed by Conv2d(C, Cout, 3, stride=2).
    out_format="NHWC" skips the final NCHW transpose (one fewer HBM pass) for
    channels-last consumers; default "NCHW" matches the PyTorch module.
    """
    N, C, H, W = x.shape
    Cout = weight.shape[0]
    Ho = (H - 2) // 2 + 1                   # = ((H + 1) - 3) // 2 + 1
    Wo = (W - 2) // 2 + 1
    Wo_p = -(-Wo // 8) * 8                  # sublane-friendly padded output width

    TH, NHB, vmem_limit = _tile_plan(N, Ho, Wo_p, C, Cout)
    Ho_pad = NHB * TH
    Hhalf = Ho_pad + 1                      # +1 half-res row for the kh=2 halo
    Whalf = Wo_p + 1
    Hpad, Wpad = 2 * Hhalf, 2 * Whalf

    # One fused pad + NHWC transpose + bf16 cast (the only activation rewrite).
    # The parity reshape below is free: it only splits H and merges (r, W, C)
    # contiguously; extra pad rows/cols are zeros feeding only discarded outputs.
    xp = jnp.pad(x, ((0, 0), (0, 0), (0, Hpad - H), (0, Wpad - W)))
    xh = jnp.transpose(xp, (0, 2, 3, 1)).astype(compute_dtype)    # (N, Hpad, Wpad, C)
    xq = xh.reshape(N, Hhalf, 2 * Whalf, 2 * C)

    # (Cout, Cin, 3, 3) -> (9, Cin, Cout): per-tap weight matrices, k = kh*3+kw.
    w9 = jnp.transpose(weight, (2, 3, 1, 0)).reshape(KH * KW, C, Cout)
    w9 = w9.astype(compute_dtype)
    b2d = bias.reshape(1, Cout).astype(jnp.float32)

    m_blk = TH * Wo_p
    main_map = lambda n, hb: (n, hb, 0, 0)
    halo_map = lambda n, hb: (n, (hb + 1) * TH, 0, 0)   # single half-res halo row

    out_flat = pl.pallas_call(
        _downsample_conv_kernel,
        out_shape=jax.ShapeDtypeStruct((N * Ho_pad * Wo_p, Cout), x.dtype),
        grid=(N, NHB),
        in_specs=[
            pl.BlockSpec((1, TH, 2 * Whalf, 2 * C), main_map),      # main rows
            pl.BlockSpec((1, 1, 2 * Whalf, 2 * C), halo_map),       # halo row
            # TODO(synk): single-buffer the constant weight/bias slabs
            # (pl.Buffered(1)) once that reliably lowers; saves 9*C*Cout*2 B VMEM.
            pl.BlockSpec((KH * KW, C, Cout), lambda n, hb: (0, 0, 0)),
            pl.BlockSpec((1, Cout), lambda n, hb: (0, 0)),
        ],
        out_specs=pl.BlockSpec((m_blk, Cout), lambda n, hb: (n * NHB + hb, 0)),
        compiler_params=pltpu.CompilerParams(
            dimension_semantics=("parallel", "parallel"),
            vmem_limit_bytes=vmem_limit),
    )(xq, xq, w9, b2d)

    out = out_flat.reshape(N, Ho_pad, Wo_p, Cout)[:, :Ho, :Wo]     # drop pad tail
    if out_format == "NHWC":
        return out
    return jnp.transpose(out, (0, 3, 1, 2))                        # NCHW (module semantics)


if __name__ == "__main__":
    N, C, H, W = 2, 4, 16, 16

    key = jax.random.PRNGKey(0)
    kx, kw_key, kb = jax.random.split(key, 3)

    x = jax.random.normal(kx, (N, C, H, W), jnp.float32)

    # Deterministic params mirroring nn.Conv2d(channels, channels, 3) shapes.
    fan_in = C * KH * KW
    bound = 1.0 / math.sqrt(fan_in)
    weight = jax.random.uniform(kw_key, (C, C, KH, KW), jnp.float32, -bound, bound)
    bias = jax.random.uniform(kb, (C,), jnp.float32, -bound, bound)

    out = downsample_block(x, weight, bias)
    out = jax.block_until_ready(out)

    # Pure-JAX f32 reference (pad (0,1,0,1) + stride-2 valid conv).
    ref = lax.conv_general_dilated(
        x, weight, window_strides=(STRIDE, STRIDE),
        padding=[(0, 1), (0, 1)],
        dimension_numbers=("NCHW", "OIHW", "NCHW"),
    ) + bias[None, :, None, None]

    Ho = (H - 2) // 2 + 1
    Wo = (W - 2) // 2 + 1
    assert out.shape == (N, C, Ho, Wo)
    # bf16 matmul operands (f32 accumulation) => small deviation vs f32 reference.
    assert jnp.allclose(out, ref, atol=2e-2, rtol=2e-2)
    print("KERNEL_OK")
</pallas_src>

<mosaic_0001>
module attributes {stable_mosaic.version = 11 : i64} {
  func.func @_downsample_conv_kernel(%arg0: i32, %arg1: i32, %arg2: memref<1x8x18x8xbf16, #tpu.memory_space<vmem>>, %arg3: memref<1x1x18x8xbf16, #tpu.memory_space<vmem>>, %arg4: memref<9x4x4xbf16, #tpu.memory_space<vmem>>, %arg5: memref<1x4xf32, #tpu.memory_space<vmem>>, %arg6: memref<64x4xf32, #tpu.memory_space<vmem>>) attributes {dimension_semantics = [#tpu.dimension_semantics<parallel>, #tpu.dimension_semantics<parallel>], iteration_bounds = array<i64: 2, 1>, scalar_prefetch = 0 : i64, scratch_operands = 0 : i64, tpu.core_type = #tpu.core_type<tc>, window_params = [{transform_indices = @transform_0, window_bounds = array<i64: 1, 8, 18, 8>}, {transform_indices = @transform_1, window_bounds = array<i64: 1, 1, 18, 8>}, {pipeline_mode = #tpu.pipeline_mode<synchronous>, transform_indices = @transform_2, window_bounds = array<i64: 9, 4, 4>}, {pipeline_mode = #tpu.pipeline_mode<synchronous>, transform_indices = @transform_3, window_bounds = array<i64: 1, 4>}, {transform_indices = @transform_4, window_bounds = array<i64: 64, 4>}]} {
    %c0 = arith.constant 0 : index
    %c0_0 = arith.constant 0 : index
    %c0_1 = arith.constant 0 : index
    %c0_2 = arith.constant 0 : index
    %0 = vector.load %arg2[%c0, %c0_0, %c0_1, %c0_2] : memref<1x8x18x8xbf16, #tpu.memory_space<vmem>>, vector<1x8x8x4xbf16>
    %1 = vector.shape_cast %0 : vector<1x8x8x4xbf16> to vector<8x8x4xbf16>
    %2 = vector.shape_cast %1 : vector<8x8x4xbf16> to vector<64x4xbf16>
    %c0_3 = arith.constant 0 : index
    %c0_4 = arith.constant 0 : index
    %c0_5 = arith.constant 0 : index
    %3 = vector.load %arg4[%c0_3, %c0_4, %c0_5] : memref<9x4x4xbf16, #tpu.memory_space<vmem>>, vector<1x4x4xbf16>
    %4 = vector.shape_cast %3 : vector<1x4x4xbf16> to vector<4x4xbf16>
    %cst = arith.constant dense<0.000000e+00> : vector<64x4xf32>
    %5 = tpu.matmul %2, %4, %cst {dimension_numbers = #tpu.dot_dimension_numbers<[1], [0], [0], [1], [0, 0, 1, 1], [], []>} : vector<64x4xbf16>, vector<4x4xbf16>, vector<64x4xf32> -> vector<64x4xf32>
    %c0_6 = arith.constant 0 : index
    %c0_7 = arith.constant 0 : index
    %c0_8 = arith.constant 0 : index
    %c4 = arith.constant 4 : index
    %6 = vector.load %arg2[%c0_6, %c0_7, %c0_8, %c4] : memref<1x8x18x8xbf16, #tpu.memory_space<vmem>>, vector<1x8x8x4xbf16>
    %7 = vector.shape_cast %6 : vector<1x8x8x4xbf16> to vector<8x8x4xbf16>
    %8 = vector.shape_cast %7 : vector<8x8x4xbf16> to vector<64x4xbf16>
    %c1 = arith.constant 1 : index
    %c0_9 = arith.constant 0 : index
    %c0_10 = arith.constant 0 : index
    %9 = vector.load %arg4[%c1, %c0_9, %c0_10] : memref<9x4x4xbf16, #tpu.memory_space<vmem>>, vector<1x4x4xbf16>
    %10 = vector.shape_cast %9 : vector<1x4x4xbf16> to vector<4x4xbf16>
    %cst_11 = arith.constant dense<0.000000e+00> : vector<64x4xf32>
    %11 = tpu.matmul %8, %10, %cst_11 {dimension_numbers = #tpu.dot_dimension_numbers<[1], [0], [0], [1], [0, 0, 1, 1], [], []>} : vector<64x4xbf16>, vector<4x4xbf16>, vector<64x4xf32> -> vector<64x4xf32>
    %12 = arith.addf %5, %11 : vector<64x4xf32>
    %c0_12 = arith.constant 0 : index
    %c0_13 = arith.constant 0 : index
    %c1_14 = arith.constant 1 : index
    %c0_15 = arith.constant 0 : index
    %13 = vector.load %arg2[%c0_12, %c0_13, %c1_14, %c0_15] : memref<1x8x18x8xbf16, #tpu.memory_space<vmem>>, vector<1x8x8x4xbf16>
    %14 = vector.shape_cast %13 : vector<1x8x8x4xbf16> to vector<8x8x4xbf16>
    %15 = vector.shape_cast %14 : vector<8x8x4xbf16> to vector<64x4xbf16>
    %c2 = arith.constant 2 : index
    %c0_16 = arith.constant 0 : index
    %c0_17 = arith.constant 0 : index
    %16 = vector.load %arg4[%c2, %c0_16, %c0_17] : memref<9x4x4xbf16, #tpu.memory_space<vmem>>, vector<1x4x4xbf16>
    %17 = vector.shape_cast %16 : vector<1x4x4xbf16> to vector<4x4xbf16>
    %cst_18 = arith.constant dense<0.000000e+00> : vector<64x4xf32>
    %18 = tpu.matmul %15, %17, %cst_18 {dimension_numbers = #tpu.dot_dimension_numbers<[1], [0], [0], [1], [0, 0, 1, 1], [], []>} : vector<64x4xbf16>, vector<4x4xbf16>, vector<64x4xf32> -> vector<64x4xf32>
    %19 = arith.addf %12, %18 : vector<64x4xf32>
    %c0_19 = arith.constant 0 : index
    %c0_20 = arith.constant 0 : index
    %c9 = arith.constant 9 : index
    %c0_21 = arith.constant 0 : index
    %20 = vector.load %arg2[%c0_19, %c0_20, %c9, %c0_21] : memref<1x8x18x8xbf16, #tpu.memory_space<vmem>>, vector<1x8x8x4xbf16>
    %21 = vector.shape_cast %20 : vector<1x8x8x4xbf16> to vector<8x8x4xbf16>
    %22 = vector.shape_cast %21 : vector<8x8x4xbf16> to vector<64x4xbf16>
    %c3 = arith.constant 3 : index
    %c0_22 = arith.constant 0 : index
    %c0_23 = arith.constant 0 : index
    %23 = vector.load %arg4[%c3, %c0_22, %c0_23] : memref<9x4x4xbf16, #tpu.memory_space<vmem>>, vector<1x4x4xbf16>
    %24 = vector.shape_cast %23 : vector<1x4x4xbf16> to vector<4x4xbf16>
    %cst_24 = arith.constant dense<0.000000e+00> : vector<64x4xf32>
    %25 = tpu.matmul %22, %24, %cst_24 {dimension_numbers = #tpu.dot_dimension_numbers<[1], [0], [0], [1], [0, 0, 1, 1], [], []>} : vector<64x4xbf16>, vector<4x4xbf16>, vector<64x4xf32> -> vector<64x4xf32>
    %26 = arith.addf %19, %25 : vector<64x4xf32>
    %c0_25 = arith.constant 0 : index
    %c0_26 = arith.constant 0 : index
    %c9_27 = arith.constant 9 : index
    %c4_28 = arith.constant 4 : index
    %27 = vector.load %arg2[%c0_25, %c0_26, %c9_27, %c4_28] : memref<1x8x18x8xbf16, #tpu.memory_space<vmem>>, vector<1x8x8x4xbf16>
    %28 = vector.shape_cast %27 : vector<1x8x8x4xbf16> to vector<8x8x4xbf16>
    %29 = vector.shape_cast %28 : vector<8x8x4xbf16> to vector<64x4xbf16>
    %c4_29 = arith.constant 4 : index
    %c0_30 = arith.constant 0 : index
    %c0_31 = arith.constant 0 : index
    %30 = vector.load %arg4[%c4_29, %c0_30, %c0_31] : memref<9x4x4xbf16, #tpu.memory_space<vmem>>, vector<1x4x4xbf16>
    %31 = vector.shape_cast %30 : vector<1x4x4xbf16> to vector<4x4xbf16>
    %cst_32 = arith.constant dense<0.000000e+00> : vector<64x4xf32>
    %32 = tpu.matmul %29, %31, %cst_32 {dimension_numbers = #tpu.dot_dimension_numbers<[1], [0], [0], [1], [0, 0, 1, 1], [], []>} : vector<64x4xbf16>, vector<4x4xbf16>, vector<64x4xf32> -> vector<64x4xf32>
    %33 = arith.addf %26, %32 : vector<64x4xf32>
    %c0_33 = arith.constant 0 : index
    %c0_34 = arith.constant 0 : index
    %c10 = arith.constant 10 : index
    %c0_35 = arith.constant 0 : index
    %34 = vector.load %arg2[%c0_33, %c0_34, %c10, %c0_35] : memref<1x8x18x8xbf16, #tpu.memory_space<vmem>>, vector<1x8x8x4xbf16>
    %35 = vector.shape_cast %34 : vector<1x8x8x4xbf16> to vector<8x8x4xbf16>
    %36 = vector.shape_cast %35 : vector<8x8x4xbf16> to vector<64x4xbf16>
    %c5 = arith.constant 5 : index
    %c0_36 = arith.constant 0 : index
    %c0_37 = arith.constant 0 : index
    %37 = vector.load %arg4[%c5, %c0_36, %c0_37] : memref<9x4x4xbf16, #tpu.memory_space<vmem>>, vector<1x4x4xbf16>
    %38 = vector.shape_cast %37 : vector<1x4x4xbf16> to vector<4x4xbf16>
    %cst_38 = arith.constant dense<0.000000e+00> : vector<64x4xf32>
    %39 = tpu.matmul %36, %38, %cst_38 {dimension_numbers = #tpu.dot_dimension_numbers<[1], [0], [0], [1], [0, 0, 1, 1], [], []>} : vector<64x4xbf16>, vector<4x4xbf16>, vector<64x4xf32> -> vector<64x4xf32>
    %40 = arith.addf %33, %39 : vector<64x4xf32>
    %c0_39 = arith.constant 0 : index
    %c0_40 = arith.constant 0 : index
    %c0_41 = arith.constant 0 : index
    %c0_42 = arith.constant 0 : index
    %41 = vector.load %arg3[%c0_39, %c0_40, %c0_41, %c0_42] : memref<1x1x18x8xbf16, #tpu.memory_space<vmem>>, vector<1x1x8x4xbf16>
    %42 = vector.shape_cast %41 : vector<1x1x8x4xbf16> to vector<8x4xbf16>
    %c6 = arith.constant 6 : index
    %c0_43 = arith.constant 0 : index
    %c0_44 = arith.constant 0 : index
    %43 = vector.load %arg4[%c6, %c0_43, %c0_44] : memref<9x4x4xbf16, #tpu.memory_space<vmem>>, vector<1x4x4xbf16>
    %44 = vector.shape_cast %43 : vector<1x4x4xbf16> to vector<4x4xbf16>
    %cst_45 = arith.constant dense<0.000000e+00> : vector<8x4xf32>
    %45 = tpu.matmul %42, %44, %cst_45 {dimension_numbers = #tpu.dot_dimension_numbers<[1], [0], [0], [1], [0, 0, 1, 1], [], []>} : vector<8x4xbf16>, vector<4x4xbf16>, vector<8x4xf32> -> vector<8x4xf32>
    %c0_46 = arith.constant 0 : index
    %c0_47 = arith.constant 0 : index
    %c0_48 = arith.constant 0 : index
    %c4_49 = arith.constant 4 : index
    %46 = vector.load %arg3[%c0_46, %c0_47, %c0_48, %c4_49] : memref<1x1x18x8xbf16, #tpu.memory_space<vmem>>, vector<1x1x8x4xbf16>
    %47 = vector.shape_cast %46 : vector<1x1x8x4xbf16> to vector<8x4xbf16>
    %c7 = arith.constant 7 : index
    %c0_50 = arith.constant 0 : index
    %c0_51 = arith.constant 0 : index
    %48 = vector.load %arg4[%c7, %c0_50, %c0_51] : memref<9x4x4xbf16, #tpu.memory_space<vmem>>, vector<1x4x4xbf16>
    %49 = vector.shape_cast %48 : vector<1x4x4xbf16> to vector<4x4xbf16>
    %cst_52 = arith.constant dense<0.000000e+00> : vector<8x4xf32>
    %50 = tpu.matmul %47, %49, %cst_52 {dimension_numbers = #tpu.dot_dimension_numbers<[1], [0], [0], [1], [0, 0, 1, 1], [], []>} : vector<8x4xbf16>, vector<4x4xbf16>, vector<8x4xf32> -> vector<8x4xf32>
    %51 = arith.addf %45, %50 : vector<8x4xf32>
    %c0_53 = arith.constant 0 : index
    %c0_54 = arith.constant 0 : index
    %c1_55 = arith.constant 1 : index
    %c0_56 = arith.constant 0 : index
    %52 = vector.load %arg3[%c0_53, %c0_54, %c1_55, %c0_56] : memref<1x1x18x8xbf16, #tpu.memory_space<vmem>>, vector<1x1x8x4xbf16>
    %53 = vector.shape_cast %52 : vector<1x1x8x4xbf16> to vector<8x4xbf16>
    %c8 = arith.constant 8 : index
    %c0_57 = arith.constant 0 : index
    %c0_58 = arith.constant 0 : index
    %54 = vector.load %arg4[%c8, %c0_57, %c0_58] : memref<9x4x4xbf16, #tpu.memory_space<vmem>>, vector<1x4x4xbf16>
    %55 = vector.shape_cast %54 : vector<1x4x4xbf16> to vector<4x4xbf16>
    %cst_59 = arith.constant dense<0.000000e+00> : vector<8x4xf32>
    %56 = tpu.matmul %53, %55, %cst_59 {dimension_numbers = #tpu.dot_dimension_numbers<[1], [0], [0], [1], [0, 0, 1, 1], [], []>} : vector<8x4xbf16>, vector<4x4xbf16>, vector<8x4xf32> -> vector<8x4xf32>
    %57 = arith.addf %51, %56 : vector<8x4xf32>
    %c0_60 = arith.constant 0 : index
    %c0_61 = arith.constant 0 : index
    %58 = vector.load %arg5[%c0_60, %c0_61] : memref<1x4xf32, #tpu.memory_space<vmem>>, vector<1x4xf32>
    %c0_62 = arith.constant 0 : index
    %c1_63 = arith.constant 1 : index
    %c0_64 = arith.constant 0 : index
    %c0_65 = arith.constant 0 : index
    %59 = vector.load %arg2[%c0_62, %c1_63, %c0_64, %c0_65] : memref<1x8x18x8xbf16, #tpu.memory_space<vmem>>, vector<1x7x8x4xbf16>
    %60 = vector.shape_cast %59 : vector<1x7x8x4xbf16> to vector<7x8x4xbf16>
    %61 = vector.shape_cast %60 : vector<7x8x4xbf16> to vector<56x4xbf16>
    %c6_66 = arith.constant 6 : index
    %c0_67 = arith.constant 0 : index
    %c0_68 = arith.constant 0 : index
    %62 = vector.load %arg4[%c6_66, %c0_67, %c0_68] : memref<9x4x4xbf16, #tpu.memory_space<vmem>>, vector<1x4x4xbf16>
    %63 = vector.shape_cast %62 : vector<1x4x4xbf16> to vector<4x4xbf16>
    %cst_69 = arith.constant dense<0.000000e+00> : vector<56x4xf32>
    %64 = tpu.matmul %61, %63, %cst_69 {dimension_numbers = #tpu.dot_dimension_numbers<[1], [0], [0], [1], [0, 0, 1, 1], [], []>} : vector<56x4xbf16>, vector<4x4xbf16>, vector<56x4xf32> -> vector<56x4xf32>
    %c0_70 = arith.constant 0 : index
    %c1_71 = arith.constant 1 : index
    %c0_72 = arith.constant 0 : index
    %c4_73 = arith.constant 4 : index
    %65 = vector.load %arg2[%c0_70, %c1_71, %c0_72, %c4_73] : memref<1x8x18x8xbf16, #tpu.memory_space<vmem>>, vector<1x7x8x4xbf16>
    %66 = vector.shape_cast %65 : vector<1x7x8x4xbf16> to vector<7x8x4xbf16>
    %67 = vector.shape_cast %66 : vector<7x8x4xbf16> to vector<56x4xbf16>
    %c7_74 = arith.constant 7 : index
    %c0_75 = arith.constant 0 : index
    %c0_76 = arith.constant 0 : index
    %68 = vector.load %arg4[%c7_74, %c0_75, %c0_76] : memref<9x4x4xbf16, #tpu.memory_space<vmem>>, vector<1x4x4xbf16>
    %69 = vector.shape_cast %68 : vector<1x4x4xbf16> to vector<4x4xbf16>
    %cst_77 = arith.constant dense<0.000000e+00> : vector<56x4xf32>
    %70 = tpu.matmul %67, %69, %cst_77 {dimension_numbers = #tpu.dot_dimension_numbers<[1], [0], [0], [1], [0, 0, 1, 1], [], []>} : vector<56x4xbf16>, vector<4x4xbf16>, vector<56x4xf32> -> vector<56x4xf32>
    %71 = arith.addf %64, %70 : vector<56x4xf32>
    %c0_78 = arith.constant 0 : index
    %c1_79 = arith.constant 1 : index
    %c1_80 = arith.constant 1 : index
    %c0_81 = arith.constant 0 : index
    %72 = vector.load %arg2[%c0_78, %c1_79, %c1_80, %c0_81] : memref<1x8x18x8xbf16, #tpu.memory_space<vmem>>, vector<1x7x8x4xbf16>
    %73 = vector.shape_cast %72 : vector<1x7x8x4xbf16> to vector<7x8x4xbf16>
    %74 = vector.shape_cast %73 : vector<7x8x4xbf16> to vector<56x4xbf16>
    %c8_82 = arith.constant 8 : index
    %c0_83 = arith.constant 0 : index
    %c0_84 = arith.constant 0 : index
    %75 = vector.load %arg4[%c8_82, %c0_83, %c0_84] : memref<9x4x4xbf16, #tpu.memory_space<vmem>>, vector<1x4x4xbf16>
    %76 = vector.shape_cast %75 : vector<1x4x4xbf16> to vector<4x4xbf16>
    %cst_85 = arith.constant dense<0.000000e+00> : vector<56x4xf32>
    %77 = tpu.matmul %74, %76, %cst_85 {dimension_numbers = #tpu.dot_dimension_numbers<[1], [0], [0], [1], [0, 0, 1, 1], [], []>} : vector<56x4xbf16>, vector<4x4xbf16>, vector<56x4xf32> -> vector<56x4xf32>
    %78 = arith.addf %71, %77 : vector<56x4xf32>
    %79 = vector.extract_strided_slice %40 {offsets = [0, 0], sizes = [56, 4], strides = [1, 1]} : vector<64x4xf32> to vector<56x4xf32>
    %80 = arith.addf %79, %78 : vector<56x4xf32>
    %81 = vector.broadcast %58 : vector<1x4xf32> to vector<56x4xf32>
    %82 = arith.addf %80, %81 : vector<56x4xf32>
    %c0_86 = arith.constant 0 : index
    %c0_87 = arith.constant 0 : index
    %83 = vector.load %arg6[%c0_86, %c0_87] : memref<64x4xf32, #tpu.memory_space<vmem>>, vector<56x4xf32>
    tpu.vector_store %arg6[%c0_86, %c0_87], %82 {strides = array<i32>} : memref<64x4xf32, #tpu.memory_space<vmem>>, vector<56x4xf32>,
    %84 = vector.extract_strided_slice %40 {offsets = [56, 0], sizes = [8, 4], strides = [1, 1]} : vector<64x4xf32> to vector<8x4xf32>
    %85 = arith.addf %84, %57 : vector<8x4xf32>
    %86 = vector.broadcast %58 : vector<1x4xf32> to vector<8x4xf32>
    %87 = arith.addf %85, %86 : vector<8x4xf32>
    %c56 = arith.constant 56 : index
    %c0_88 = arith.constant 0 : index
    %88 = vector.load %arg6[%c56, %c0_88] : memref<64x4xf32, #tpu.memory_space<vmem>>, vector<8x4xf32>
    tpu.vector_store %arg6[%c56, %c0_88], %87 {strides = array<i32>} : memref<64x4xf32, #tpu.memory_space<vmem>>, vector<8x4xf32>,
    return
  }
  func.func @transform_0(%arg0: i32, %arg1: i32) -> (i32, i32, i32, i32) {
    %c0_i32 = arith.constant 0 : i32
    %c0_i32_0 = arith.constant 0 : i32
    %c0_i32_1 = arith.constant 0 : i32
    return %arg0, %arg1, %c0_i32, %c0_i32_0 : i32, i32, i32, i32
  }
  func.func @transform_1(%arg0: i32, %arg1: i32) -> (i32, i32, i32, i32) {
    %c1_i32 = arith.constant 1 : i32
    %0 = arith.addi %arg1, %c1_i32 : i32
    %c8_i32 = arith.constant 8 : i32
    %1 = arith.muli %0, %c8_i32 : i32
    %c0_i32 = arith.constant 0 : i32
    %c0_i32_0 = arith.constant 0 : i32
    %c0_i32_1 = arith.constant 0 : i32
    return %arg0, %1, %c0_i32, %c0_i32_0 : i32, i32, i32, i32
  }
  func.func @transform_2(%arg0: i32, %arg1: i32) -> (i32, i32, i32) {
    %c0_i32 = arith.constant 0 : i32
    %c0_i32_0 = arith.constant 0 : i32
    %c0_i32_1 = arith.constant 0 : i32
    %c0_i32_2 = arith.constant 0 : i32
    return %c0_i32, %c0_i32_0, %c0_i32_1 : i32, i32, i32
  }
  func.func @transform_3(%arg0: i32, %arg1: i32) -> (i32, i32) {
    %c0_i32 = arith.constant 0 : i32
    %c0_i32_0 = arith.constant 0 : i32
    %c0_i32_1 = arith.constant 0 : i32
    return %c0_i32, %c0_i32_0 : i32, i32
  }
  func.func @transform_4(%arg0: i32, %arg1: i32) -> (i32, i32) {
    %c1_i32 = arith.constant 1 : i32
    %0 = arith.muli %arg0, %c1_i32 : i32
    %1 = arith.addi %0, %arg1 : i32
    %c0_i32 = arith.constant 0 : i32
    %c0_i32_0 = arith.constant 0 : i32
    return %1, %c0_i32 : i32, i32
  }
}

</mosaic_0001>

<bundles_post_ra>
// kernel: tpu_custom_call.1
= control target key start
LH: loop header
LB: loop body
LE: loop exit
PB: predicated region body
PF: predicated region fallthrough
CT: control target
= control target key end

     0   :  { %s2294_s15 = smov 0   ;;  %s2296_s16 = smov 0   ;;  %s2850_s0 = inlined_call_operand.vmem [shape: bf16[2,9,18,8], index: 0, kind: input, shape index: {}]   ;;  %s2851_s1 = inlined_call_operand.vmem [shape: bf16[2,9,18,8], index: 1, kind: input, shape index: {}]   ;;  %s2852_s2 = inlined_call_operand.vmem [shape: bf16[9,4,4], index: 2, kind: input, shape index: {}]   ;;  %s2853_s3 = inlined_call_operand.vmem [shape: f32[1,4], index: 3, kind: input, shape index: {}]   ;;  %s2854_s4 = inlined_call_operand.vmem [shape: f32[128,4], index: 4, kind: output, shape index: {}]  }
   0x1   :  { %s2298_s17 = smov 0  }
   0x2 LB: > { %s26_s18 = sadd.s32 1, %s2260_s16  ;;  %p1922_p0 = scmp.ge.s32.totalorder %s2264_s17, 1  ;;  %s2264_s17 = sphi %s2298_s17, %s14_s17   ;;  %s2260_s16 = sphi %s2296_s16, %s2874_s16   ;;  %s2256_s15 = sphi %s2294_s15, %s2873_s15  }
   0x3   : > { %p28_p1 = scmp.ge.s32.totalorder %s26_s18, 2  ;;  %p218_p2 = scmp.lt.s32.totalorder %s2264_s17, 3 }
   0x5   : > { %s2876_s18 = smov (%p28_p1, %s26_s18), 0  ;;  %p219_p3 = pnand %p1922_p0, %p218_p2 }
   0x7   : > { %222 = sbr.rel (%p219_p3) target bundleno = 419 (0x1a3), region = 36 }
   0xc   : > { %p272_p4 = scmp.lt.s32.totalorder %s2256_s15, 1  ;;  %v317_v0 = vld [vmem:[%s2852_s2] sm:$0x3]  ;;  %vm361_vm0 = vcmask 1041408   ;;  %v1949_v2 = vld [vmem:[%s2852_s2 + $0x6] sm:$0x3] }
   0xd   : > { %2194 = vmatprep.subr.msk.bf16.mxu1 %vm361_vm0, %v317_v0  ;;  %v443_v1 = vsel %vm361_vm0, %v317_v0, 0  ;;  %v1927_v3 = vld [vmem:[%s2852_s2 + $0x2] sm:$0x3]  ;;  %v2334_v5 = vld [vmem:[%s2852_s2 + $0x4] sm:$0x3]  ;;  %vm348_vm2 = vcmask 31744  }
   0xe   : > { %s2319_s21 = scalar_select %p272_p4, %s2256_s15, 1  ;;  %2096 = vmatpush3.bf16.msra.mxu1 %v443_v1  ;;  %2193 = vmatprep.subr.msk.bf16.mxu0 %vm361_vm0, %v1927_v3  ;;  %v363_v4 = vsel %vm361_vm0, %v1927_v3, 0  ;;  %vm526_vm1 = vsmask.f32 3328  ;;  %v898_v6 = vsel %vm361_vm0, %v1949_v2, 0  ;;  %vm1095_vm5 = vcmask 1042432  }
   0xf   : > { %2196 = vmatprep.subr.msk.bf16.mxu1 %vm361_vm0, %v1949_v2  ;;  %2086 = vmatpush3.bf16.msra.mxu0 %v363_v4  ;;  %s2266_s6 = smov 124   ;;  %vm527_vm3 = vsmask.f32 7440  ;;  %vm1096_vm6 = vcmask 1046532   ;;  %vm2268_vm8 = vmmov 0   ;;  %s1925_s25 = sshll.u32 %s2256_s15, 3 }
  0x10   : > { %s2202_s28 = smul.u32 108, %s2319_s21  ;;  %2195 = vmatprep.subr.msk.bf16.mxu0 %vm361_vm0, %v2334_v5  ;;  %vm2380_vm4 = vmor %vm526_vm1, %vm527_vm3  ;;  %p302_p5 = scmp.lt.s32.totalorder %s1925_s25, 15 }
  0x11   : > { %vm2433_vm7 = vmor %vm1095_vm5, %vm1096_vm6 }
  0x12   : > { %s2345_s5 = scalar_lea.vmem %s2850_s0, %s2202_s28  ;;  %s2033_s7 = sadd.s32 96, %s2202_s28 }
  0x13   : > { %v2232_v7 = vld [vmem:[%s2345_s5] ss:$12 sps:$4 sm:$0xff]   ;;  %v2233_v8 = vld [vmem:[%s2345_s5 + $0x18] ss:$12 sps:$4 sm:$0xff]   ;;  %v2234_v9 = vld [vmem:[%s2345_s5 + $0x30] ss:$12 sps:$4 sm:$0xff]   ;;  %s2409_s10 = scalar_lea.vmem %s2851_s1, %s2033_s7 }
  0x14   : > { %340 = vrot.lane.b32.xlu0 %v2232_v7, %s2266_s6  ;;  %2097 = vmatprep.mubr.msk.bf16.mxu1 %vm348_vm2, %v2232_v7  ;;  %v2235_v10 = vld [vmem:[%s2345_s5 + $0x48] ss:$12 sps:$4 sm:$0xff]   ;;  %v743_v11 = vld [vmem:[%s2345_s5 + $0x4] sm:$0xf]  ;;  %v745_v13 = vld [vmem:[%s2345_s5 + $0x10] sm:$0xf] }
  0x15   : > { %2098 = vmatmul.mubr.msk.bf16.vlgmr.msra.gmra.mxu1 %vm348_vm2, %v2233_v8  ;;  %344 = vrot.lane.b32.xlu1 %v2234_v9, %s2266_s6  ;;  %v2358_v12 = vld [vmem:[%s2345_s5 + $0x8] sm:$0x1]  ;;  %v2362_v14 = vld [vmem:[%s2345_s5 + $0x14] sm:$0x1]  ;;  %v760_v15 = vshrl.u32 %v743_v11, 16  ;;  %v763_v16 = vshll.u32 %v743_v11, 16 }
  0x16   : > { %2116 = vmatpush3.bf16.msra.mxu1 %v898_v6  ;;  %v769_v17 = vshll.u32 %v2358_v12, 16  ;;  %v774_v18 = vshrl.u32 %v745_v13, 16  ;;  %2101 = vmatprep.mubr.msk.bf16.mxu1 %vm348_vm2, %v2234_v9  ;;  %v777_v19 = vshll.u32 %v745_v13, 16  ;;  %v783_v20 = vshll.u32 %v2362_v14, 16  ;;  %v747_v21 = vld [vmem:[%s2345_s5 + $0x1c] sm:$0xf] }
  0x17   : > { %v762_v22 = vrot.slane %v760_v15, 4  ;;  %v765_v23 = vrot.slane %v763_v16, 5  ;;  %v2370_v26 = vld [vmem:[%s2345_s5 + $0x20] sm:$0x1]  ;;  %v749_v29 = vld [vmem:[%s2345_s5 + $0x28] sm:$0xf] }
  0x18   : > { %342 = vrot.lane.b32.xlu0 %v2233_v8, %s2266_s6  ;;  %v771_v24 = vrot.slane %v769_v17, 5  ;;  %v776_v25 = vrot.slane %v774_v18, 4  ;;  %v779_v27 = vrot.slane %v777_v19, 5  ;;  %v785_v28 = vrot.slane %v783_v20, 5  ;;  %v2375_v30 = vld [vmem:[%s2345_s5 + $0x2c] sm:$0x1] }
  0x19   : > { %346 = vrot.lane.b32.xlu1 %v2235_v10, %s2266_s6  ;;  %v766_v31 = vor.u32 %v765_v23, %v762_v22  ;;  %v788_v32 = vshrl.u32 %v747_v21, 16  ;;  %v791_v33 = vshll.u32 %v747_v21, 16  ;;  %v797_v34 = vshll.u32 %v2370_v26, 16  ;;  %v751_v46 = vld [vmem:[%s2345_s5 + $0x34] sm:$0xf]  ;;  %s2878_s25 = smov (!%p302_p5, %s1925_s25), 15 }
  0x1a   : > { %v780_v36 = vor.u32 %v779_v27, %v776_v25  ;;  %v802_v37 = vshrl.u32 %v749_v29, 16  ;;  %v805_v38 = vshll.u32 %v749_v29, 16  ;;  %v811_v39 = vshll.u32 %v2375_v30, 16  ;;  %v2390_v50 = vld [vmem:[%s2345_s5 + $0x38] sm:$0x1]  ;;  %s1926_s15 = sshll.u32 %s2878_s25, 3 }
  0x1b   : > { %v767_v40 = vrot.slane %v766_v31, 4  ;;  %v790_v41 = vrot.slane %v788_v32, 4  ;;  %v793_v42 = vrot.slane %v791_v33, 5  ;;  %v799_v49 = vrot.slane %v797_v34, 5  ;;  %v753_v54 = vld [vmem:[%s2345_s5 + $0x40] sm:$0xf]  ;;  %s2778_s30 = scalar_lea.vmem %s2854_s4, %s1926_s15 }
  0x1c   : > { %v781_v43 = vrot.slane %v780_v36, 4  ;;  %v804_v44 = vrot.slane %v802_v37, 4  ;;  %v807_v45 = vrot.slane %v805_v38, 5  ;;  %v813_v53 = vrot.slane %v811_v39, 5  ;;  %v2398_v57 = vld [vmem:[%s2345_s5 + $0x44] sm:$0x1] }
  0x1d   : > { %2102 = vmatmul.mubr.msk.bf16.gmra.mxu1 %vm348_vm2, %v2235_v10  ;;  %v772_v47 = vsel %vm2380_vm4, %v767_v40, %v771_v24  ;;  %v794_v48 = vor.u32 %v793_v42, %v790_v41  ;;  %v816_v58 = vshrl.u32 %v751_v46, 16  ;;  %v755_v59 = vld [vmem:[%s2345_s5 + $0x4c] sm:$0xf]  ;;  %v1100_v60 = vrot.slane %v2358_v12, 5  ;;  %v2404_v0 = vld [vmem:[%s2345_s5 + $0x50] sm:$0x1] }
  0x1e   : > { %v786_v51 = vsel %vm2380_vm4, %v781_v43, %v785_v28  ;;  %v808_v52 = vor.u32 %v807_v45, %v804_v44  ;;  %v819_v62 = vshll.u32 %v751_v46, 16  ;;  %v825_v63 = vshll.u32 %v2390_v50, 16  ;;  %v1073_v7 = vld [vmem:[%s2345_s5 + $0x1c] sm:$0xe]  ;;  %v757_v10 = vld [vmem:[%s2345_s5 + $0x58] sm:$0xf] }
  0x1f   : > { %v1950_v55 = vcombine.low %v772_v47, %v786_v51  ;;  %v795_v56 = vrot.slane %v794_v48, 4  ;;  %v818_v2 = vrot.slane %v816_v58, 4  ;;  %v830_v3 = vshrl.u32 %v753_v54, 16  ;;  %v1074_v13 = vld [vmem:[%s2345_s5 + $0x28] sm:$0xe] }
  0x20   : > { %v809_v61 = vrot.slane %v808_v52, 4  ;;  %v833_v4 = vshll.u32 %v753_v54, 16  ;;  %v821_v8 = vrot.slane %v819_v62, 5  ;;  %v839_v9 = vshll.u32 %v2398_v57, 16  ;;  %v2422_v17 = vld [vmem:[%s2345_s5 + $0x5c] sm:$0x1] }
  0x21   : > { %975 = vrot.lane.b32.xlu0 %v1950_v55, %s2266_s6  ;;  %v800_v1 = vsel %vm2380_vm4, %v795_v56, %v799_v49  ;;  %2117 = vmatprep.mubr.msk.bf16.mxu1 %vm348_vm2, %v1950_v55  ;;  %v832_v15 = vrot.slane %v830_v3, 4  ;;  %v827_v19 = vrot.slane %v825_v63, 5  ;;  %v844_v21 = vshrl.u32 %v755_v59, 16  ;;  %v1971_v58 = vld [vmem:[%s2852_s2 + $0xa] sm:$0x3] }
  0x22   : > { %v814_v6 = vsel %vm2380_vm4, %v809_v61, %v813_v53  ;;  %v835_v16 = vrot.slane %v833_v4, 5  ;;  %v822_v18 = vor.u32 %v821_v8, %v818_v2  ;;  %v841_v20 = vrot.slane %v839_v9, 5  ;;  %2198 = vmatprep.subr.msk.bf16.mxu1 %vm361_vm0, %v1971_v58  ;;  %v512_v2 = vld [vmem:[%s2345_s5 + $0xc] sm:$0xf] }
  0x23   : > { %v1951_v11 = vcombine.low %v800_v1, %v814_v6  ;;  %v847_v23 = vshll.u32 %v755_v59, 16  ;;  %v853_v24 = vshll.u32 %v2404_v0, 16  ;;  %v858_v25 = vshrl.u32 %v757_v10, 16  ;;  %v510_v59 = vld [vmem:[%s2345_s5] sm:$0xf] }
  0x24   : > { %v836_v22 = vor.u32 %v835_v16, %v832_v15  ;;  %v823_v27 = vrot.slane %v822_v18, 4  ;;  %v846_v28 = vrot.slane %v844_v21, 4  ;;  %v861_v29 = vshll.u32 %v757_v10, 16  ;;  %v511_v1 = vld [vmem:[%s2345_s5 + $0x4] sm:$0x1] }
  0x25   : > { %977 = vrot.lane.b32.xlu1 %v1951_v11, %s2266_s6  ;;  %2118 = vmatmul.mubr.msk.bf16.vlgmr.msra.gmra.mxu1 %vm348_vm2, %v1951_v11  ;;  %v867_v31 = vshll.u32 %v2422_v17, 16  ;;  %v1965_v32 = vrot.slane %v1073_v7, 9  ;;  %v849_v34 = vrot.slane %v847_v23, 5  ;;  %v860_v36 = vrot.slane %v858_v25, 4  ;;  %v513_v6 = vld [vmem:[%s2345_s5 + $0x10] sm:$0x1] }
  0x26   : > { %v837_v33 = vrot.slane %v836_v22, 4  ;;  %v1108_v37 = vrot.slane %v2370_v26, 5  ;;  %v1966_v38 = vrot.slane %v1074_v13, 9  ;;  %v828_v39 = vsel %vm2380_vm4, %v823_v27, %v827_v19  ;;  %v2441_v26 = vld [vmem:[%s2409_s10] sm:$0xf] }
  0x27   : > { %v863_v40 = vrot.slane %v861_v29, 5  ;;  %v1112_v42 = vrot.slane %v2375_v30, 5  ;;  %v850_v44 = vor.u32 %v849_v34, %v846_v28  ;;  %v855_v45 = vrot.slane %v853_v24, 5  ;;  %v2473_v11 = vld [vmem:[%s2345_s5 + $0xc] ss:$12 sps:$4 sm:$0xff]  }
  0x28   : > { %v842_v43 = vsel %vm2380_vm4, %v837_v33, %v841_v20  ;;  %v1104_v46 = vrot.slane %v2362_v14, 5  ;;  %v869_v49 = vrot.slane %v867_v31, 5  ;;  %v1116_v51 = vrot.slane %v2390_v50, 5  ;;  %v2476_v13 = vld [vmem:[%s2345_s5 + $0x24] ss:$12 sps:$4 sm:$0xff]  }
  0x29   : > { %v1952_v47 = vcombine.low %v828_v39, %v842_v43  ;;  %v864_v48 = vor.u32 %v863_v40, %v860_v36  ;;  %v1120_v52 = vrot.slane %v2398_v57, 5  ;;  %v851_v30 = vrot.slane %v850_v44, 4  ;;  %v514_v24 = vld [vmem:[%s2345_s5 + $0x18] sm:$0xf]  ;;  %v515_v28 = vld [vmem:[%s2345_s5 + $0x1c] sm:$0x1] }
  0x2a   : > { %v1124_v53 = vrot.slane %v2404_v0, 5  ;;  %v2449_v54 = vsel %vm2433_vm7, %v1965_v32, %v1108_v37  ;;  %v1982_v56 = vcombine.low %v2441_v26, %v2441_v26  ;;  %v2461_v61 = vsel %vm2433_vm7, %v1966_v38, %v1112_v42  ;;  %v516_v29 = vld [vmem:[%s2345_s5 + $0x24] sm:$0xf]  ;;  %v2489_v32 = vld [vmem:[%s2345_s5 + $0x54] ss:$0 sps:$4 sm:$0xff]  }
  0x2b   : > { %979 = vrot.lane.b32.xlu0 %v1952_v47, %s2266_s6  ;;  %v865_v55 = vrot.slane %v864_v48, 4  ;;  %2121 = vmatprep.mubr.msk.bf16.mxu1 %vm348_vm2, %v1952_v47  ;;  %v856_v62 = vsel %vm2380_vm4, %v851_v30, %v855_v45  ;;  %v1157_v63 = vsel %vm361_vm0, %v1971_v58, 0  ;;  %v530_v3 = vshrl.u32 %v510_v59, 16  ;;  %v517_v34 = vld [vmem:[%s2345_s5 + $0x28] sm:$0x1] }
  0x2c   : > { %2136 = vmatpush3.bf16.msra.mxu1 %v1157_v63  ;;  %v533_v7 = vshll.u32 %v510_v59, 16  ;;  %v539_v8 = vshll.u32 %v511_v1, 16  ;;  %v544_v9 = vshrl.u32 %v512_v2, 16  ;;  %v547_v16 = vshll.u32 %v512_v2, 16  ;;  %v2493_v39 = vld [vmem:[%s2345_s5 + $0x3c] ss:$12 sps:$4 sm:$0xff]  }
  0x2d   : > { %v870_v4 = vsel %vm2380_vm4, %v865_v55, %v869_v49  ;;  %v532_v15 = vrot.slane %v530_v3, 4  ;;  %v553_v18 = vshll.u32 %v513_v6, 16  ;;  %v2267_v19 = vmov 0.0   ;;  %v1071_v45 = vld [vmem:[%s2345_s5 + $0x4] sm:$0xe] }
  0x2e   : > { %v1953_v10 = vcombine.low %v856_v62, %v870_v4  ;;  %2151 = vmatprep.subr.bf16.mxu1 %v2267_v19  ;;  %v1128_v20 = vrot.slane %v2422_v17, 5  ;;  %v535_v21 = vrot.slane %v533_v7, 5  ;;  %v541_v22 = vrot.slane %v539_v8, 5  ;;  %v519_v6 = vld [vmem:[%s2345_s5 + $0x34] sm:$0x1] }
  0x2f   : > { %1240 = vrot.lane.b32.xlu0 %v1982_v56, %s2266_s6  ;;  %v546_v23 = vrot.slane %v544_v9, 4  ;;  %v549_v25 = vrot.slane %v547_v16, 5  ;;  %v555_v27 = vrot.slane %v553_v18, 5  ;;  %v1973_v31 = vcombine.low %v2449_v54, %v2461_v61  ;;  %v1072_v54 = vld [vmem:[%s2345_s5 + $0x10] sm:$0xe] }
  0x30   : > { %981 = vrot.lane.b32.xlu1 %v1953_v10, %s2266_s6  ;;  %2122 = vmatmul.mubr.msk.bf16.gmra.mxu1 %vm348_vm2, %v1953_v10  ;;  %v536_v33 = vor.u32 %v535_v21, %v532_v15  ;;  %v558_v36 = vshrl.u32 %v514_v24, 16  ;;  %v561_v37 = vshll.u32 %v514_v24, 16  ;;  %v567_v38 = vshll.u32 %v515_v28, 16  ;;  %v518_v61 = vld [vmem:[%s2345_s5 + $0x30] sm:$0xf] }
  0x31   : > { %v550_v40 = vor.u32 %v549_v25, %v546_v23  ;;  %v572_v42 = vshrl.u32 %v516_v29, 16  ;;  %v575_v43 = vshll.u32 %v516_v29, 16  ;;  %v581_v44 = vshll.u32 %v517_v34, 16  ;;  %v520_v7 = vld [vmem:[%s2345_s5 + $0x3c] sm:$0xf] }
  0x32   : > { %v537_v47 = vrot.slane %v536_v33, 4  ;;  %v560_v48 = vrot.slane %v558_v36, 4  ;;  %v563_v49 = vrot.slane %v561_v37, 5  ;;  %v569_v30 = vrot.slane %v567_v38, 5  ;;  %v521_v21 = vld [vmem:[%s2345_s5 + $0x40] sm:$0x1] }
  0x33   : > { %1426 = vrot.lane.b32.xlu0 %v2476_v13, %s2266_s6  ;;  %v551_v55 = vrot.slane %v550_v40, 4  ;;  %v574_v56 = vrot.slane %v572_v42, 4  ;;  %v577_v58 = vrot.slane %v575_v43, 5  ;;  %v583_v59 = vrot.slane %v581_v44, 5  ;;  %v523_v28 = vld [vmem:[%s2345_s5 + $0x4c] sm:$0x1] }
  0x34   : > { %1424 = vrot.lane.b32.xlu1 %v2473_v11, %s2266_s6  ;;  %v542_v62 = vsel %vm2380_vm4, %v537_v47, %v541_v22  ;;  %v564_v63 = vor.u32 %v563_v49, %v560_v48  ;;  %v1963_v1 = vrot.slane %v1071_v45, 9  ;;  %v1964_v2 = vrot.slane %v1072_v54, 9  ;;  %v522_v22 = vld [vmem:[%s2345_s5 + $0x48] sm:$0xf]  ;;  %v525_v37 = vld [vmem:[%s2345_s5 + $0x58] sm:$0x1] }
  0x35   : > { %v556_v3 = vsel %vm2380_vm4, %v551_v55, %v555_v27  ;;  %v578_v4 = vor.u32 %v577_v58, %v574_v56  ;;  %v586_v8 = vshrl.u32 %v518_v61, 16  ;;  %v589_v9 = vshll.u32 %v518_v61, 16  ;;  %v2535_v40 = vld [vmem:[%s2852_s2 + $0xc] sm:$0x3]  ;;  %v1075_v47 = vld [vmem:[%s2345_s5 + $0x34] sm:$0xe] }
  0x36   : > { %v2510_v10 = vcombine.low %v542_v62, %v556_v3  ;;  %v565_v15 = vrot.slane %v564_v63, 4  ;;  %v1101_v16 = vsel %vm2433_vm7, %v1963_v1, %v1100_v60  ;;  %v1105_v18 = vsel %vm2433_vm7, %v1964_v2, %v1104_v46  ;;  %v524_v46 = vld [vmem:[%s2345_s5 + $0x54] sm:$0xf]  ;;  %v1076_v48 = vld [vmem:[%s2345_s5 + $0x40] sm:$0xe] }
  0x37   : > { %1430 = vrot.lane.b32.xlu0 %v2489_v32, %s2266_s6  ;;  %v579_v23 = vrot.slane %v578_v4, 4  ;;  %v1972_v24 = vcombine.low %v1101_v16, %v1105_v18  ;;  %v588_v25 = vrot.slane %v586_v8, 4  ;;  %v591_v27 = vrot.slane %v589_v9, 5  ;;  %v1077_v56 = vld [vmem:[%s2345_s5 + $0x4c] sm:$0xe] }
  0x38   : > { %1428 = vrot.lane.b32.xlu1 %v2493_v39, %s2266_s6  ;;  %v570_v12 = vsel %vm2380_vm4, %v565_v15, %v569_v30  ;;  %v595_v60 = vshll.u32 %v519_v6, 16  ;;  %v600_v14 = vshrl.u32 %v520_v7, 16  ;;  %v603_v29 = vshll.u32 %v520_v7, 16  ;;  %v1981_v63 = vld [vmem:[%s2852_s2 + $0xe] sm:$0x3] }
  0x39   : > { %v584_v33 = vsel %vm2380_vm4, %v579_v23, %v583_v59  ;;  %2137 = vmatprep.mubr.msk.bf16.mxu1 %vm348_vm2, %v1972_v24  ;;  %v592_v34 = vor.u32 %v591_v27, %v588_v25  ;;  %v609_v36 = vshll.u32 %v521_v21, 16  ;;  %v614_v38 = vshrl.u32 %v522_v22, 16  ;;  %v1078_v4 = vld [vmem:[%s2345_s5 + $0x58] sm:$0xe] }
  0x3a   : > { %v2537_v42 = vcombine.low %v570_v12, %v584_v33  ;;  %2138 = vmatmul.mubr.msk.bf16.vlgmr.msra.gmra.mxu1 %vm348_vm2, %v1973_v31  ;;  %v597_v43 = vrot.slane %v595_v60, 5  ;;  %v602_v44 = vrot.slane %v600_v14, 4  ;;  %v605_v45 = vrot.slane %v603_v29, 5  ;;  %v2007_v14 = vld [vmem:[%s2345_s5 + $0xc] sm:$0xf] }
  0x3b   : > { %v593_v49 = vrot.slane %v592_v34, 4  ;;  %v611_v30 = vrot.slane %v609_v36, 5  ;;  %v616_v54 = vrot.slane %v614_v38, 4  ;;  %v617_v55 = vshll.u32 %v522_v22, 16  ;;  %v2009_v57 = vld [vmem:[%s2345_s5 + $0x18] sm:$0xf] }
  0x3c   : > { %v606_v58 = vor.u32 %v605_v45, %v602_v44  ;;  %v623_v59 = vshll.u32 %v523_v28, 16  ;;  %v628_v61 = vshrl.u32 %v524_v46, 16  ;;  %v631_v62 = vshll.u32 %v524_v46, 16  ;;  %v2010_v36 = vld [vmem:[%s2345_s5 + $0x1c] sm:$0x1] }
  0x3d   : > { %v598_v31 = vsel %vm2380_vm4, %v593_v49, %v597_v43  ;;  %v619_v1 = vrot.slane %v617_v55, 5  ;;  %v637_v2 = vshll.u32 %v525_v37, 16  ;;  %v2550_v3 = vsel %vm361_vm0, %v2535_v40, 0  ;;  %v2011_v37 = vld [vmem:[%s2345_s5 + $0x24] sm:$0xf] }
  0x3e   : > { %v607_v6 = vrot.slane %v606_v58, 4  ;;  %v625_v7 = vrot.slane %v623_v59, 5  ;;  %v630_v8 = vrot.slane %v628_v61, 4  ;;  %v633_v9 = vrot.slane %v631_v62, 5  ;;  %2152 = vmatpush3.bf16.msra.mxu1 %v2550_v3  ;;  %v2013_v45 = vld [vmem:[%s2345_s5 + $0x30] sm:$0xf] }
  0x3f   : > { %v620_v15 = vor.u32 %v619_v1, %v616_v54  ;;  %v639_v16 = vrot.slane %v637_v2, 5  ;;  %v1967_v18 = vrot.slane %v1075_v47, 9  ;;  %v1968_v21 = vrot.slane %v1076_v48, 9  ;;  %2199 = vmatprep.subr.msk.bf16.mxu1 %vm361_vm0, %v1981_v63  ;;  %v2015_v61 = vld [vmem:[%s2345_s5 + $0x3c] sm:$0xf] }
  0x40   : > { %v612_v22 = vsel %vm2380_vm4, %v607_v6, %v611_v30  ;;  %v634_v23 = vor.u32 %v633_v9, %v630_v8  ;;  %v1969_v24 = vrot.slane %v1077_v56, 9  ;;  %v1970_v25 = vrot.slane %v1078_v4, 9  ;;  %v2014_v30 = vld [vmem:[%s2345_s5 + $0x34] sm:$0x1] }
  0x41   : > { %v2557_v27 = vcombine.low %v598_v31, %v612_v22  ;;  %v621_v28 = vrot.slane %v620_v15, 4  ;;  %v1117_v12 = vsel %vm2433_vm7, %v1967_v18, %v1116_v51  ;;  %v1121_v60 = vsel %vm2433_vm7, %v1968_v21, %v1120_v52  ;;  %v2008_v51 = vld [vmem:[%s2345_s5 + $0x10] sm:$0x1] }
  0x42   : > { %v635_v29 = vrot.slane %v634_v23, 4  ;;  %v1974_v46 = vcombine.low %v1117_v12, %v1121_v60  ;;  %v1125_v33 = vsel %vm2433_vm7, %v1969_v24, %v1124_v53  ;;  %v1129_v50 = vsel %vm2433_vm7, %v1970_v25, %v1128_v20  ;;  %v2012_v53 = vld [vmem:[%s2345_s5 + $0x28] sm:$0x1] }
  0x43   : > { %v626_v52 = vsel %vm2380_vm4, %v621_v28, %v625_v7  ;;  %v1975_v34 = vcombine.low %v1125_v33, %v1129_v50  ;;  %v2586_v17 = vsel %vm361_vm0, %v1981_v63, 0  ;;  %v1599_v41 = vshrl.u32 %v2007_v14, 16  ;;  %v2017_v25 = vld [vmem:[%s2345_s5 + $0x48] sm:$0xf]  ;;  %v2602_v28 = vld [vmem:[%s2852_s2 + $0x10] sm:$0x3] }
  0x44   : > { %v640_v0 = vsel %vm2380_vm4, %v635_v29, %v639_v16  ;;  %2141 = vmatprep.mubr.msk.bf16.mxu1 %vm348_vm2, %v1974_v46  ;;  %v1602_v38 = vshll.u32 %v2007_v14, 16  ;;  %v1608_v43 = vshll.u32 %v2008_v51, 16  ;;  %v1613_v44 = vshrl.u32 %v2009_v57, 16  ;;  %v2016_v16 = vld [vmem:[%s2345_s5 + $0x40] sm:$0x1] }
  0x45   : > { %v2589_v20 = vcombine.low %v626_v52, %v640_v0  ;;  %2142 = vmatmul.mubr.msk.bf16.gmra.mxu1 %vm348_vm2, %v1975_v34  ;;  %v1601_v47 = vrot.slane %v1599_v41, 4  ;;  %v1616_v48 = vshll.u32 %v2009_v57, 16  ;;  %v1622_v49 = vshll.u32 %v2010_v36, 16  ;;  %v2018_v51 = vld [vmem:[%s2345_s5 + $0x4c] sm:$0x1] }
  0x46   : > { %2153 = vmatprep.mubr.msk.bf16.mxu1 %vm2268_vm8, %v2267_v19  ;;  %v1627_v54 = vshrl.u32 %v2011_v37, 16  ;;  %v1604_v55 = vrot.slane %v1602_v38, 5  ;;  %v1610_v56 = vrot.slane %v1608_v43, 5  ;;  %v1615_v58 = vrot.slane %v1613_v44, 4  ;;  %v2019_v52 = vld [vmem:[%s2345_s5 + $0x54] sm:$0xf] }
  0x47   : > { %v1630_v59 = vshll.u32 %v2011_v37, 16  ;;  %v1618_v62 = vrot.slane %v1616_v48, 5  ;;  %v1624_v63 = vrot.slane %v1622_v49, 5  ;;  %v1636_v1 = vshll.u32 %v2012_v53, 16  ;;  %v2020_v41 = vld [vmem:[%s2345_s5 + $0x58] sm:$0x1] }
  0x48   : > { %v1629_v31 = vrot.slane %v1627_v54, 4  ;;  %v1605_v2 = vor.u32 %v1604_v55, %v1601_v47  ;;  %v1641_v6 = vshrl.u32 %v2013_v45, 16  ;;  %v1644_v7 = vshll.u32 %v2013_v45, 16 }
  0x49   : > { %v1632_v4 = vrot.slane %v1630_v59, 5  ;;  %v1619_v8 = vor.u32 %v1618_v62, %v1615_v58  ;;  %v1638_v9 = vrot.slane %v1636_v1, 5  ;;  %v1650_v15 = vshll.u32 %v2014_v30, 16 }
  0x4a   : > { %v1655_v18 = vshrl.u32 %v2015_v61, 16  ;;  %v1606_v21 = vrot.slane %v1605_v2, 4  ;;  %v1643_v23 = vrot.slane %v1641_v6, 4  ;;  %v1646_v24 = vrot.slane %v1644_v7, 5 }
  0x4b   : > { %v1633_v22 = vor.u32 %v1632_v4, %v1629_v31  ;;  %v1620_v12 = vrot.slane %v1619_v8, 4  ;;  %v1652_v60 = vrot.slane %v1650_v15, 5  ;;  %v1658_v29 = vshll.u32 %v2015_v61, 16 }
  0x4c   : > { %v1657_v14 = vrot.slane %v1655_v18, 4  ;;  %v1611_v46 = vsel %vm2380_vm4, %v1606_v21, %v1610_v56  ;;  %v1647_v50 = vor.u32 %v1646_v24, %v1643_v23  ;;  %v1664_v57 = vshll.u32 %v2016_v16, 16 }
  0x4d   : > { %2154 = vmatmul.mubr.msk.bf16.vlgmr.msra.gmra.mxu1 %vm348_vm2, %v2441_v26  ;;  %v1634_v33 = vrot.slane %v1633_v22, 4  ;;  %v1625_v34 = vsel %vm2380_vm4, %v1620_v12, %v1624_v63  ;;  %v1660_v36 = vrot.slane %v1658_v29, 5  ;;  %v1669_v37 = vshrl.u32 %v2017_v25, 16  ;;  %v1958_v22 = vld [vmem:[%s2852_s2 + $0x8] sm:$0x3] }
  0x4e   : > { %2164 = vmatpush3.bf16.msra.mxu1 %v2586_v17  ;;  %v1672_v0 = vshll.u32 %v2017_v25, 16  ;;  %v2616_v26 = vcombine.low %v1611_v46, %v1625_v34  ;;  %v1648_v38 = vrot.slane %v1647_v50, 4  ;;  %v1666_v43 = vrot.slane %v1664_v57, 5  ;;  %v2237_v29 = vld [vmem:[%s2409_s10] sm:$0x1f]  }
  0x4f   : > { %2201 = vmatprep.subr.msk.bf16.mxu1 %vm361_vm0, %v2602_v28  ;;  %v1639_v53 = vsel %vm2380_vm4, %v1634_v33, %v1638_v9  ;;  %v1661_v44 = vor.u32 %v1660_v36, %v1657_v14  ;;  %v1671_v45 = vrot.slane %v1669_v37, 4  ;;  %v1678_v48 = vshll.u32 %v2018_v51, 16 }
  0x50   : > { %v1674_v47 = vrot.slane %v1672_v0, 5  ;;  %v1653_v49 = vsel %vm2380_vm4, %v1648_v38, %v1652_v60  ;;  %v1683_v30 = vshrl.u32 %v2019_v52, 16  ;;  %v1686_v54 = vshll.u32 %v2019_v52, 16 }
  0x51   : > { %v1692_v55 = vshll.u32 %v2020_v41, 16  ;;  %v2022_v56 = vcombine.low %v1639_v53, %v1653_v49  ;;  %v1662_v58 = vrot.slane %v1661_v44, 4  ;;  %v1680_v61 = vrot.slane %v1678_v48, 5 }
  0x52   : > { %v1675_v59 = vor.u32 %v1674_v47, %v1671_v45  ;;  %v1685_v62 = vrot.slane %v1683_v30, 4  ;;  %v1688_v63 = vrot.slane %v1686_v54, 5  ;;  %v668_v16 = vsel %vm361_vm0, %v2334_v5, 0 }
  0x53   : > { %v1667_v31 = vsel %vm2380_vm4, %v1662_v58, %v1666_v43  ;;  %v1694_v4 = vrot.slane %v1692_v55, 5  ;;  %v996_v5 = vsel %vm361_vm0, %v1958_v22, 0 }
  0x54   : > { %v1676_v1 = vrot.slane %v1675_v59, 4  ;;  %v1689_v2 = vor.u32 %v1688_v63, %v1685_v62 }
  0x56   : > { %v1681_v6 = vsel %vm2380_vm4, %v1676_v1, %v1680_v61  ;;  %v1690_v8 = vrot.slane %v1689_v2, 4 }
  0x57   : > { %v2023_v7 = vcombine.low %v1667_v31, %v1681_v6 }
  0x58   : > { %v1695_v9 = vsel %vm2380_vm4, %v1690_v8, %v1694_v4 }
  0x59   : > { %v2024_v50 = vcombine.low %v1695_v9, %v1695_v9 }
  0x86   : > { %v341_v15 = vpop.permute.xlu0 %340 }
  0x87   : > { %2087 = vmatprep.mubr.msk.bf16.mxu0 %vm348_vm2, %v341_v15  ;;  %v345_v18 = vpop.permute.xlu1 %344 }
  0x8a   : > { %v343_v21 = vpop.permute.xlu0 %342 }
  0x8b   : > { %2088 = vmatmul.mubr.msk.bf16.vlgmr.msra.gmra.mxu0 %vm348_vm2, %v343_v21  ;;  %v347_v35 = vpop.permute.xlu1 %346 }
  0x8c   : > { %2106 = vmatpush3.bf16.msra.mxu0 %v668_v16  ;;  %2091 = vmatprep.mubr.msk.bf16.mxu0 %vm348_vm2, %v345_v18 }
  0x8d   : > { %2197 = vmatprep.subr.msk.bf16.mxu0 %vm361_vm0, %v1958_v22 }
  0x93   : > { %2092 = vmatmul.mubr.msk.bf16.gmra.mxu0 %vm348_vm2, %v347_v35  ;;  %v976_v23 = vpop.permute.xlu0 %975 }
  0x94   : > { %2107 = vmatprep.mubr.msk.bf16.mxu0 %vm348_vm2, %v2510_v10 }
  0x97   : > { %v978_v25 = vpop.permute.xlu1 %977 }
  0x9b   : > { %2108 = vmatmul.mubr.msk.bf16.vlgmr.msra.gmra.mxu0 %vm348_vm2, %v2537_v42  ;;  %v1354_v42 = vsel %vm361_vm0, %v2602_v28, 0  ;;  %v1344_v28 = vshrl.u32 %v2237_v29, 16 }
  0x9c   : > { %2126 = vmatpush3.bf16.msra.mxu0 %v996_v5  ;;  %2111 = vmatprep.mubr.msk.bf16.mxu0 %vm348_vm2, %v2557_v27 }
  0x9d   : > { %2145 = vmatprep.subr.bf16.mxu0 %v2267_v19  ;;  %v980_v24 = vpop.permute.xlu0 %979 }
  0xa1   : > { %v1241_v10 = vpop.permute.xlu0 %1240 }
  0xa2   : > { %v982_v12 = vpop.permute.xlu1 %981 }
  0xa3   : > { %2112 = vmatmul.mubr.msk.bf16.gmra.mxu0 %vm348_vm2, %v2589_v20 }
  0xa4   : > { %2127 = vmatprep.mubr.msk.bf16.mxu0 %vm348_vm2, %v976_v23 }
  0xa5   : > { %v1427_v60 = vpop.permute.xlu0 %1426 }
  0xa6   : > { %v1425_v14 = vpop.permute.xlu1 %1424 }
  0xa7   : > { %2165 = vmatprep.mubr.msk.bf16.mxu1 %vm348_vm2, %v1425_v14 }
  0xa8   : > { %2166 = vmatmul.mubr.msk.bf16.vlgmr.msra.gmra.mxu1 %vm348_vm2, %v1427_v60 }
  0xa9   : > { %2184 = vmatpush3.bf16.msra.mxu1 %v1354_v42  ;;  %v1431_v20 = vpop.permute.xlu0 %1430 }
  0xaa   : > { %v1429_v27 = vpop.permute.xlu1 %1428 }
  0xab   : > { %2128 = vmatmul.mubr.msk.bf16.vlgmr.msra.gmra.mxu0 %vm348_vm2, %v978_v25  ;;  %2169 = vmatprep.mubr.msk.bf16.mxu1 %vm348_vm2, %v1429_v27 }
  0xac   : > { %2146 = vmatpush3.bf16.msra.mxu0 %v2586_v17  ;;  %2131 = vmatprep.mubr.msk.bf16.mxu0 %vm348_vm2, %v980_v24  ;;  %v1346_v17 = vshll.u32 %v2237_v29, 16 }
  0xad   : > { %2157 = vmatprep.subr.bf16.mxu0 %v2267_v19 }
  0xae   : > { %v1348_v46 = vrot.slane %v1346_v17, 1 }
  0xb0   : > { %2170 = vmatmul.mubr.msk.bf16.gmra.mxu1 %vm348_vm2, %v1431_v20  ;;  %v1349_v33 = vor.u32 %v1348_v46, %v1344_v28 }
  0xb1   : > { %2185 = vmatprep.mubr.msk.bf16.mxu1 %vm348_vm2, %v2616_v26 }
  0xb3   : > { %2132 = vmatmul.mubr.msk.bf16.gmra.mxu0 %vm348_vm2, %v982_v12 }
  0xb4   : > { %2147 = vmatprep.mubr.msk.bf16.mxu0 %vm2268_vm8, %v2267_v19 }
  0xb8   : > { %2186 = vmatmul.mubr.msk.bf16.vlgmr.msra.gmra.mxu1 %vm348_vm2, %v2022_v56 }
  0xb9   : > { %2189 = vmatprep.mubr.msk.bf16.mxu1 %vm348_vm2, %v2023_v7 }
  0xbb   : > { %2148 = vmatmul.mubr.msk.bf16.vlgmr.msra.gmra.mxu0 %vm348_vm2, %v1241_v10 }
  0xbc   : > { %2158 = vmatpush3.bf16.msra.mxu0 %v1354_v42  ;;  %2159 = vmatprep.mubr.msk.bf16.mxu0 %vm2268_vm8, %v2267_v19 }
  0xbd   : > { %2200 = vmatprep.subr.msk.bf16.mxu0 %vm361_vm0, %v2535_v40 }
  0xc0   : > { %2190 = vmatmul.mubr.msk.bf16.gmra.mxu1 %vm348_vm2, %v2024_v50 }
  0xc3   : > { %2160 = vmatmul.mubr.msk.bf16.vlgmr.msra.gmra.mxu0 %vm348_vm2, %v1349_v33 }
  0xc4   : > { %2174 = vmatpush3.bf16.msra.mxu0 %v2550_v3  ;;  %2175 = vmatprep.mubr.msk.bf16.mxu0 %vm348_vm2, %v2473_v11 }
  0xcb   : > { %2176 = vmatmul.mubr.msk.bf16.vlgmr.msra.gmra.mxu0 %vm348_vm2, %v2476_v13 }
  0xcc   : > { %2179 = vmatprep.mubr.msk.bf16.mxu0 %vm348_vm2, %v2493_v39 }
  0xd3   : > { %2180 = vmatmul.mubr.msk.bf16.gmra.mxu0 %vm348_vm2, %v2489_v32 }
  0xd5   : > { %v2683_v19 = vpop.f32.mrf.mxu1 }
  0xd7   : > { %v2685_v40 = vpop.f32.mrf.mxu1 }
  0xd9   : > { %v2687_v51 = vpop.f32.mrf.mxu1 }
  0xdb   : > { %v2689_v57 = vpop.f32.mrf.mxu1 }
  0xdd   : > { %v2691_v3 = vpop.f32.mrf.mxu1 }
  0xdf   : > { %v2693_v11 = vpop.f32.mrf.mxu1 }
  0xe1   : > { %v2104_v52 = vpop.f32.mrf.mxu1 }
  0xe3   : > { %v2695_v13 = vpop.f32.mrf.mxu1 }
  0xe5   : > { %v2697_v34 = vpop.f32.mrf.mxu1 }
  0xe7   : > { %v2699_v39 = vpop.f32.mrf.mxu1 }
  0xe9   : > { %v2701_v32 = vpop.f32.mrf.mxu1 }
  0xeb   : > { %v2703_v36 = vpop.f32.mrf.mxu1 }
  0xf0   : > { %v2705_v37 = vpop.f32.mrf.mxu1 }
  0xf2   : > { %v2707_v0 = vpop.f32.mrf.mxu1 }
  0xf4   : > { %v2124_v41 = vpop.f32.mrf.mxu1 }
  0xf6   : > { %v2709_v26 = vpop.f32.mrf.mxu1 }
  0xf7   : > { %2859 = vst [vmem:[#allocation2_spill] sm:$0xff] %v2709_v26 }
  0xfa   : > { %v2711_v53 = vpop.f32.mrf.mxu1 }
  0xfc   : > { %v2713_v38 = vpop.f32.mrf.mxu1 }
  0xfe   : > { %v2715_v43 = vpop.f32.mrf.mxu1 }
 0x100   : > { %v2717_v44 = vpop.f32.mrf.mxu1 }
 0x105   : > { %v2719_v45 = vpop.f32.mrf.mxu1 }
 0x106   : > { %2860 = vst [vmem:[#allocation3_spill] sm:$0xff] %v2719_v45 }
 0x107   : > { %v2721_v47 = vpop.f32.mrf.mxu1 }
 0x108   : > { %2861 = vst [vmem:[#allocation4_spill] sm:$0xff] %v2721_v47 }
 0x109   : > { %v2144_v48 = vpop.f32.mrf.mxu1 }
 0x10b   : > { %v2723_v49 = vpop.f32.mrf.mxu1 }
 0x10c   : > { %2862 = vst [vmem:[#allocation5_spill] sm:$0xff] %v2723_v49 }
 0x10d   : > { %v1328_v30 = vpop.f32.mrf.mxu1 }
 0x10f   : > { %v2155_v54 = vpop.f32.mrf.mxu1 }
 0x111   : > { %v1331_v55 = vpop.f32.mrf.mxu1 }
 0x113   : > { %v2156_v56 = vpop.f32.mrf.mxu1 }
 0x14b   : > { %v2089_v58 = vpop.f32.mrf.mxu0 }
 0x14d   : > { %v399_v59 = vpop.f32.mrf.mxu0 }
 0x14f   : > { %v2090_v61 = vpop.f32.mrf.mxu0 }
 0x151   : > { %v402_v62 = vpop.f32.mrf.mxu0 }
 0x153   : > { %v2725_v63 = vpop.f32.mrf.mxu0 }
 0x155   : > { %v2727_v31 = vpop.f32.mrf.mxu0 }
 0x157   : > { %v2094_v1 = vpop.f32.mrf.mxu0 }
 0x158   : > { %v507_v29 = vadd.f32 %v2104_v52, %v2094_v1  ;;  %v488_v52 = vadd.f32 %v2683_v19, %v2089_v58  ;;  %v483_v58 = vadd.f32 %v2689_v57, %v402_v62  ;;  %v496_v62 = vadd.f32 %v2693_v11, %v2727_v31 }
 0x159   : > { %v2729_v2 = vpop.f32.mrf.mxu0 }
 0x15a   : > { %v499_v11 = vadd.f32 %v2695_v13, %v2729_v2 }
 0x15b   : > { %v2109_v4 = vpop.f32.mrf.mxu0 }
 0x15d   : > { %v704_v6 = vpop.f32.mrf.mxu0 }
 0x15f   : > { %v2110_v7 = vpop.f32.mrf.mxu0 }
 0x161   : > { %v707_v8 = vpop.f32.mrf.mxu0 }
 0x163   : > { %v2731_v9 = vpop.f32.mrf.mxu0 }
 0x165   : > { %v2733_v15 = vpop.f32.mrf.mxu0 }
 0x167   : > { %v2114_v16 = vpop.f32.mrf.mxu0 }
 0x168   : > { %v2737_v22 = vpop.f32.mrf.mxu1  ;;  %v742_v46 = vadd.f32 %v2114_v16, %v507_v29  ;;  %v480_v16 = vadd.f32 %v2685_v40, %v399_v59  ;;  %v737_v29 = vadd.f32 %v2109_v4, %v488_v52  ;;  %v504_v59 = vadd.f32 %v2691_v3, %v2725_v63 }
 0x169   : > { %v2735_v18 = vpop.f32.mrf.mxu0  ;;  %v739_v3 = vadd.f32 %v2733_v15, %v496_v62 }
 0x16a   : > { %v2739_v5 = vpop.f32.mrf.mxu1  ;;  %v972_v56 = vadd.f32 %v2124_v41, %v742_v46  ;;  %v491_v41 = vadd.f32 %v2687_v51, %v2090_v61  ;;  %v735_v19 = vadd.f32 %v704_v6, %v480_v16  ;;  %v736_v61 = vadd.f32 %v707_v8, %v483_v58  ;;  %v2866_v16 = vld [vmem:[#allocation3_spill] sm:$0xff] }
 0x16b   : > { %v2129_v21 = vpop.f32.mrf.mxu0  ;;  %v969_v13 = vadd.f32 %v2707_v0, %v739_v3 }
 0x16c   : > { %v2741_v24 = vpop.f32.mrf.mxu1  ;;  %v738_v46 = vadd.f32 %v2110_v7, %v491_v41  ;;  %v965_v57 = vadd.f32 %v2699_v39, %v735_v19  ;;  %v741_v7 = vadd.f32 %v2731_v9, %v504_v59  ;;  %v966_v8 = vadd.f32 %v2703_v36, %v736_v61 }
 0x16d   : > { %v1032_v35 = vpop.f32.mrf.mxu0 }
 0x16e   : > { %v2745_v10 = vpop.f32.mrf.mxu1  ;;  %v971_v31 = vadd.f32 %v2705_v37, %v741_v7 }
 0x16f   : > { %v2130_v23 = vpop.f32.mrf.mxu0 }
 0x170   : > { %v2749_v60 = vpop.f32.mrf.mxu1 }
 0x171   : > { %v2743_v25 = vpop.f32.mrf.mxu0 }
 0x172   : > { %v2753_v42 = vpop.f32.mrf.mxu1 }
 0x173   : > { %v2747_v12 = vpop.f32.mrf.mxu0  ;;  %2863 = vst [vmem:[#allocation6_spill] sm:$0xff] %v2753_v42 }
 0x174   : > { %v2172_v20 = vpop.f32.mrf.mxu1 }
 0x175   : > { %v2751_v14 = vpop.f32.mrf.mxu0 }
 0x176   : > { %v2758_v28 = vpop.f32.mrf.mxu1 }
 0x177   : > { %v2134_v27 = vpop.f32.mrf.mxu0  ;;  %2865 = vst [vmem:[#allocation8_spill] sm:$0xff] %v2758_v28 }
 0x178   : > { %v2187_v50 = vpop.f32.mrf.mxu1  ;;  %v1070_v26 = vadd.f32 %v2134_v27, %v972_v56 }
 0x179   : > { %v2755_v17 = vpop.f32.mrf.mxu0 }
 0x17a   : > { %2864 = vst [vmem:[#allocation7_spill] sm:$0xff] %v2755_v17  ;;  %v1753_v55 = vpop.f32.mrf.mxu1  ;;  %v1231_v28 = vadd.f32 %v2144_v48, %v1070_v26  ;;  %v967_v26 = vadd.f32 %v2697_v34, %v737_v29 }
 0x17b   : > { %v1282_v33 = vpop.f32.mrf.mxu0 }
 0x17c   : > { %v2188_v47 = vpop.f32.mrf.mxu1  ;;  %v1329_v1 = vadd.f32 %v1328_v30, %v1282_v33  ;;  %v1065_v6 = vadd.f32 %v2129_v21, %v967_v26  ;;  %v1063_v33 = vadd.f32 %v1032_v35, %v965_v57  ;;  %v2872_v57 = vld [vmem:[#allocation5_spill] sm:$0xff] }
 0x17d   : > { %v2149_v54 = vpop.f32.mrf.mxu0 }
 0x17e   : > { %v2760_v45 = vpop.f32.mrf.mxu1  ;;  %v1226_v39 = vadd.f32 %v2711_v53, %v1065_v6  ;;  %v740_v53 = vadd.f32 %v2735_v18, %v499_v11  ;;  %v2871_v61 = vld [vmem:[#allocation8_spill] sm:$0xff] }
 0x17f   : > { %v1285_v49 = vpop.f32.mrf.mxu0 }
 0x180   : > { %v2763_v17 = vpop.f32.mrf.mxu1  ;;  %v2770_v49 = vld [vmem:[%s2853_s3] ss:$0 sm:$0xff] }
 0x181   : > { %v2150_v42 = vpop.f32.mrf.mxu0 }
 0x182   : > { %v2772_v27 = vpop.f32.mrf.mxu1 }
 0x183   : > { %v1390_v20 = vpop.f32.mrf.mxu0 }
 0x184   : > { %v1396_v54 = vadd.f32 %v1390_v20, %v1329_v1  ;;  %v2192_v51 = vpop.f32.mrf.mxu1 }
 0x185   : > { %v2161_v42 = vpop.f32.mrf.mxu0 }
 0x186   : > { %v1817_v30 = vadd.f32 %v1396_v54, %v1231_v28  ;;  %v968_v28 = vadd.f32 %v2701_v32, %v738_v46  ;;  %v1064_v32 = vadd.f32 %v2743_v25, %v966_v8  ;;  %v2868_v42 = vld [vmem:[#allocation6_spill] sm:$0xff]  ;;  %v1772_v6 = vpop.f32.mrf.mxu1 }
 0x187   : > { %v1393_v40 = vpop.f32.mrf.mxu0 }
 0x188   : > { %v1818_v48 = vadd.f32 %v2770_v49, %v1817_v30  ;;  %v1066_v63 = vadd.f32 %v2130_v23, %v968_v28  ;;  %v2869_v30 = vld [vmem:[#allocation4_spill] sm:$0xff] }
 0x189   : > { %v2162_v4 = vpop.f32.mrf.mxu0 }
 0x18a   : > { %1819 = vst.msk [vmem:[%s2778_s30 + $0x38] sm:$0xff] %vm348_vm2, %v1818_v48  ;;  %v1227_v23 = vadd.f32 %v2715_v43, %v1066_v63 }
 0x18b   : > { %v2177_v34 = vpop.f32.mrf.mxu0 }
 0x18c   : > { %v1563_v56 = vadd.f32 %v2177_v34, %v2737_v22  ;;  %v1224_v22 = vadd.f32 %v2713_v38, %v1063_v33 }
 0x18d   : > { %v1554_v21 = vpop.f32.mrf.mxu0 }
 0x18e   : > { %v1785_v52 = vadd.f32 %v2187_v50, %v1563_v56  ;;  %v1555_v1 = vadd.f32 %v1554_v21, %v2739_v5  ;;  %v1069_v5 = vadd.f32 %v2747_v12, %v971_v31 }
 0x18f   : > { %v2178_v9 = vpop.f32.mrf.mxu0 }
 0x190   : > { %v1792_v15 = vadd.f32 %v1785_v52, %v1226_v39  ;;  %v1783_v35 = vadd.f32 %v1753_v55, %v1555_v1  ;;  %v1566_v36 = vadd.f32 %v2178_v9, %v2741_v24  ;;  %v1225_v55 = vadd.f32 %v2717_v44, %v1064_v32 }
 0x191   : > { %v1557_v2 = vpop.f32.mrf.mxu0  ;;  %v1067_v24 = vadd.f32 %v2751_v14, %v969_v13  ;;  %v1230_v29 = vadd.f32 %v2866_v16, %v1069_v5 }
 0x192   : > { %v1805_v37 = vadd.f32 %v2770_v49, %v1792_v15  ;;  %v1790_v25 = vadd.f32 %v1783_v35, %v1224_v22  ;;  %v1786_v50 = vadd.f32 %v2188_v47, %v1566_v36  ;;  %v1558_v38 = vadd.f32 %v1557_v2, %v2745_v10  ;;  %v2867_v47 = vld [vmem:[#allocation2_spill] sm:$0xff] }
 0x193   : > { %v2181_v20 = vpop.f32.mrf.mxu0  ;;  %v970_v10 = vadd.f32 %v2867_v47, %v740_v53 }
 0x194   : > { %1812 = vst.msk [vmem:[%s2778_s30 + $0x10] sm:$0xff] %vm348_vm2, %v1805_v37  ;;  %v1803_v43 = vadd.f32 %v2770_v49, %v1790_v25  ;;  %v1793_v18 = vadd.f32 %v1786_v50, %v1227_v23  ;;  %v1784_v0 = vadd.f32 %v2760_v45, %v1558_v38  ;;  %v1579_v12 = vadd.f32 %v2181_v20, %v2749_v60  ;;  %v2870_v60 = vld [vmem:[#allocation7_spill] sm:$0xff] }
 0x195   : > { %v1570_v54 = vpop.f32.mrf.mxu0  ;;  %v1228_v45 = vadd.f32 %v2869_v30, %v1067_v24  ;;  %v1068_v46 = vadd.f32 %v2870_v60, %v970_v10 }
 0x196   : > { %1810 = vst.msk [vmem:[%s2778_s30] sm:$0xff] %vm348_vm2, %v1803_v43  ;;  %v1806_v44 = vadd.f32 %v2770_v49, %v1793_v18  ;;  %v1791_v14 = vadd.f32 %v1784_v0, %v1225_v55  ;;  %v1789_v41 = vadd.f32 %v2763_v17, %v1579_v12  ;;  %v1571_v19 = vadd.f32 %v1570_v54, %v2868_v42 }
 0x197   : > { %v2182_v58 = vpop.f32.mrf.mxu0  ;;  %v1229_v62 = vadd.f32 %v2872_v57, %v1068_v46 }
 0x198   : > { %1813 = vst.msk [vmem:[%s2778_s30 + $0x18] sm:$0xff] %vm348_vm2, %v1806_v44  ;;  %v1804_v40 = vadd.f32 %v2770_v49, %v1791_v14  ;;  %v1796_v51 = vadd.f32 %v1789_v41, %v1230_v29  ;;  %v1787_v26 = vadd.f32 %v2772_v27, %v1571_v19 }
 0x199   : > { %v1573_v48 = vpop.f32.mrf.mxu0 }
 0x19a   : > { %1811 = vst.msk [vmem:[%s2778_s30 + $0x8] sm:$0xff] %vm348_vm2, %v1804_v40  ;;  %v1809_v17 = vadd.f32 %v2770_v49, %v1796_v51  ;;  %v1794_v59 = vadd.f32 %v1787_v26, %v1228_v45  ;;  %v1574_v4 = vadd.f32 %v1573_v48, %v2871_v61 }
 0x19c   : > { %1816 = vst.msk [vmem:[%s2778_s30 + $0x30] sm:$0xff] %vm348_vm2, %v1809_v17  ;;  %v1807_v7 = vadd.f32 %v2770_v49, %v1794_v59  ;;  %v1788_v28 = vadd.f32 %v1772_v6, %v1574_v4 }
 0x19e   : > { %1814 = vst.msk [vmem:[%s2778_s30 + $0x20] sm:$0xff] %vm348_vm2, %v1807_v7  ;;  %v1795_v34 = vadd.f32 %v1788_v28, %v1229_v62 }
 0x1a0   : > { %v1808_v27 = vadd.f32 %v2770_v49, %v1795_v34 }
 0x1a2   : > { %1815 = vst.msk [vmem:[%s2778_s30 + $0x28] sm:$0xff] %vm348_vm2, %v1808_v27 }
 0x1a3 PF: > { %s14_s17 = sadd.s32 1, %s2264_s17   ;;  %s2873_s15 = smov %s2260_s16 }
 0x1a4   : > { %p11_p6 = scmp.ge.s32.totalorder %s14_s17, 4   ;;  %s2874_s16 = smov %s2876_s18 }
 0x1a6   :  { %13 = sbr.rel (!%p11_p6) target bundleno = 2 (0x2), region = 78 }

</bundles_post_ra>
